<compile_context>
chip_gen: v5e
topology: v5e:2x2
jax: 0.10.0
libtpu: 0.0.40
codegen_flags: <defaults>
</compile_context>

<pallas_src>
import functools

import jax
import jax.numpy as jnp
from jax import lax
from jax.experimental import pallas as pl
from jax.experimental.pallas import tpu as pltpu


# ---------------------------------------------------------------------------
# Kernel
# ---------------------------------------------------------------------------
def _rnn_kernel(x_ref, wih_ref, whh_ref, b_ref, wout_ref, bout_ref,
                o_ref, h_ref, pre_ref, *, activation, time_chunk, unroll):
    """One (batch-block, time-chunk) grid step of the vanilla-RNN recurrence.

    x_ref    : (TC, BN, D_in) time-major input slab
    wih_ref  : (D_in, H)   rnn.weight_ih_l0^T
    whh_ref  : (H, H)      rnn.weight_hh_l0^T
    b_ref    : (1, H)      b_ih + b_hh   (f32)
    wout_ref : (H, O)      out.weight^T
    bout_ref : (1, O)      out.bias      (f32)
    o_ref    : (BN, O)     final output block (written on last time chunk)
    h_ref    : (BN, H)     f32 carried hidden state (scratch, persists over chunks)
    pre_ref  : (TC, BN, H) f32 per-chunk input projection (scratch)
    """
    c = pl.program_id(1)  # time-chunk index (sequential recurrence axis)

    # h_0 = 0 (the module's a_0 is None); re-init at the start of each batch block.
    @pl.when(c == 0)
    def _():
        h_ref[...] = jnp.zeros_like(h_ref)

    if activation == "tanh":
        act = jnp.tanh
    elif activation == "relu":
        act = lambda v: jnp.maximum(v, 0.0)
    else:
        raise ValueError(activation + " activation function is not supported")

    tc, bn, d_in = x_ref.shape
    h_dim = whh_ref.shape[0]

    # ---- Hoisted input projection (off the h-dependent critical path) ------
    # One big MXU matmul for the whole time chunk, bias folded in.  The
    # merge/split reshapes are layout-trivial because BN % 8 == 0 (wrapper pads
    # the batch to a multiple of 8).
    x2d = x_ref[...].reshape(tc * bn, d_in)
    pre_x = jnp.dot(x2d, wih_ref[...], preferred_element_type=jnp.float32)
    pre_ref[...] = (pre_x + b_ref[...]).reshape(tc, bn, h_dim)

    # ---- Serial recurrence: only h @ W_hh^T + precomputed slice + act ------
    whh = whh_ref[...]          # hoisted, loop-invariant
    h0 = h_ref[...]             # f32 carried state

    def step(i, h):
        pre = pre_ref[i] + jnp.dot(h.astype(whh.dtype), whh,
                                   preferred_element_type=jnp.float32)
        return act(pre)

    if time_chunk <= unroll:
        h = h0
        for i in range(time_chunk):          # short chunk: full static unroll
            h = step(i, h)
    else:
        # Bounded unroll keeps LLO scheduling visibility without blowing
        # live ranges / vregs for deep chunks.
        h = lax.fori_loop(0, time_chunk, step, h0, unroll=unroll)

    h_ref[...] = h  # carry to the next time chunk

    # ---- Fused final Linear on the last chunk, using the live h ------------
    @pl.when(c == pl.num_programs(1) - 1)
    def _():
        o_ref[...] = (jnp.dot(h.astype(wout_ref.dtype), wout_ref[...],
                              preferred_element_type=jnp.float32)
                      + bout_ref[...]).astype(o_ref.dtype)


# ---------------------------------------------------------------------------
# Tiling helpers
# ---------------------------------------------------------------------------
def _largest_divisor_leq(n, cap):
    cap = max(1, min(n, cap))
    for d in range(cap, 0, -1):
        if n % d == 0:
            return d
    return 1


def _largest_mult8_divisor_leq(n, cap):
    """Largest divisor of n that is a multiple of 8 and <= cap (n % 8 == 0)."""
    cap = min(n, cap)
    d = cap - (cap % 8)
    while d >= 8:
        if n % d == 0:
            return d
        d -= 8
    return 8


def _vmem_bytes(BN, TC, D_in, H, O, in_bytes, w_bytes, weight_bufs):
    x_slab = 2 * BN * TC * D_in * in_bytes            # double-buffered X block
    pre = TC * BN * H * 4                             # projection scratch
    matmul_tmp = TC * BN * H * 4                      # live matmul result pre-store
    h_state = BN * H * 4
    out_blk = 2 * BN * O * 4
    weights = weight_bufs * (D_in * H + H * H + H * O) * w_bytes
    biases = weight_bufs * (H + O) * 4
    return x_slab + pre + matmul_tmp + h_state + out_blk + weights + biases + (1 << 20)


# ---------------------------------------------------------------------------
# Wrapper
# ---------------------------------------------------------------------------
def rnn_forward(X, W_ih, W_hh, b_ih, b_hh, W_out, b_out, *, activation="tanh"):
    """Forward pass matching the PyTorch module.

    X:     (N, T, D_in)  batch-first, like nn.RNN(batch_first=True)
    W_ih:  (H, D_in)     rnn.weight_ih_l0
    W_hh:  (H, H)        rnn.weight_hh_l0
    b_ih:  (H,)          rnn.bias_ih_l0
    b_hh:  (H,)          rnn.bias_hh_l0
    W_out: (O, H)        out.weight
    b_out: (O,)          out.bias
    returns (N, O)  float32
    """
    if activation not in ("tanh", "relu"):
        raise ValueError(activation + " activation function is not supported")

    N, T, D_in = X.shape
    H = W_hh.shape[0]
    O = W_out.shape[0]

    # Mixed precision: bf16 MXU operands only when the contractions are big enough
    # to be MXU-bound; tiny H/D_in stays f32 (the per-step bf16 cast would be pure
    # overhead on a mostly-idle MXU and hurts parity with the f32 reference).
    use_bf16 = max(D_in, H) >= 256
    p_dtype = jnp.bfloat16 if use_bf16 else jnp.float32
    p_bytes = 2 if use_bf16 else 4

    # Pad the batch to a multiple of 8 (sublane-aligned batch block -> free reshapes).
    N_pad = ((N + 7) // 8) * 8
    if N_pad != N:
        X = jnp.pad(X, ((0, N_pad - N), (0, 0), (0, 0)))

    # Tile selection under a ~40 MiB VMEM budget (fits v7x's 64 MiB physical VMEM
    # with headroom; trivially fits v5e/v6e's 128 MiB).  BN <= 128 so batches >= 256
    # give >= 2 "parallel" batch blocks to shard across v7x's 2 TensorCores.
    budget = 40 << 20
    BN = _largest_mult8_divisor_leq(N_pad, 128)
    TC = _largest_divisor_leq(T, 64 if D_in <= 256 else 32)
    while _vmem_bytes(BN, TC, D_in, H, O, p_bytes, p_bytes, 1) > budget and TC > 1:
        TC = _largest_divisor_leq(T, TC - 1)
    while _vmem_bytes(BN, TC, D_in, H, O, p_bytes, p_bytes, 1) > budget and BN > 8:
        BN = _largest_mult8_divisor_leq(N_pad, BN - 8)
    footprint = _vmem_bytes(BN, TC, D_in, H, O, p_bytes, p_bytes, 1)
    if footprint > budget:
        raise ValueError(
            f"RNN kernel tiles (BN={BN}, TC={TC}) need {footprint} B of VMEM, over "
            f"the {budget} B budget; shapes are too large for this kernel.")
    vmem_limit = int(min(max(footprint + (8 << 20), 32 << 20), 48 << 20))

    # Glue (plain XLA, not the hot path): time-major X so per-step access inside the
    # kernel is a pure leading-axis offset; pre-transposed weights; combined bias.
    x_tm = jnp.transpose(X, (1, 0, 2)).astype(p_dtype)           # (T, N_pad, D_in)
    wih_t = jnp.transpose(W_ih).astype(p_dtype)                  # (D_in, H)
    whh_t = jnp.transpose(W_hh).astype(p_dtype)                  # (H, H)
    b = (b_ih + b_hh).reshape(1, H).astype(jnp.float32)          # (1, H)
    wout_t = jnp.transpose(W_out).astype(p_dtype)                # (H, O)
    bout = b_out.reshape(1, O).astype(jnp.float32)               # (1, O)

    kernel = functools.partial(_rnn_kernel, activation=activation,
                               time_chunk=TC, unroll=8)

    def build(single_buffer_weights):
        def const_spec(shape):
            idx_map = lambda bb, c: (0,) * len(shape)
            if single_buffer_weights:
                # Constant blocks never change -> single buffer halves their VMEM cost.
                return pl.BlockSpec(shape, idx_map, pipeline_mode=pl.Buffered(1))
            return pl.BlockSpec(shape, idx_map)

        return pl.pallas_call(
            kernel,
            out_shape=jax.ShapeDtypeStruct((N_pad, O), jnp.float32),
            grid_spec=pltpu.PrefetchScalarGridSpec(
                num_scalar_prefetch=0,
                grid=(N_pad // BN, T // TC),
                in_specs=[
                    pl.BlockSpec((TC, BN, D_in), lambda bb, c: (c, bb, 0)),
                    const_spec((D_in, H)),
                    const_spec((H, H)),
                    const_spec((1, H)),
                    const_spec((H, O)),
                    const_spec((1, O)),
                ],
                out_specs=pl.BlockSpec((BN, O), lambda bb, c: (bb, 0)),
                scratch_shapes=[
                    pltpu.VMEM((BN, H), jnp.float32),      # carried hidden state
                    pltpu.VMEM((TC, BN, H), jnp.float32),  # per-chunk input projection
                ],
            ),
            compiler_params=pltpu.CompilerParams(
                # The time axis MUST stay sequential on one core ("arbitrary"): the
                # h_ref scratch carries the recurrence across time chunks.  Only the
                # batch axis is parallel (MXU fill / v7x 2-TC sharding).
                dimension_semantics=("parallel", "arbitrary"),
                vmem_limit_bytes=vmem_limit,
            ),
        )

    try:
        out = build(True)(x_tm, wih_t, whh_t, b, wout_t, bout)
    except Exception:
        # Fallback if single-buffered (Buffered(1)) constant blocks are rejected by
        # this jax/Mosaic version; default double-buffering only costs extra VMEM.
        out = build(False)(x_tm, wih_t, whh_t, b, wout_t, bout)

    return out[:N]


# ---------------------------------------------------------------------------
# Pure-JAX reference (mirrors torch nn.RNN(batch_first=True) + Linear)
# ---------------------------------------------------------------------------
def _reference_forward(X, W_ih, W_hh, b_ih, b_hh, W_out, b_out, *,
                       activation="tanh", operand_dtype=jnp.float32):
    act = jnp.tanh if activation == "tanh" else (lambda v: jnp.maximum(v, 0.0))
    cast = lambda a: a.astype(operand_dtype).astype(jnp.float32)
    hp = jax.lax.Precision.HIGHEST
    N, T, _ = X.shape
    H = W_hh.shape[0]
    h = jnp.zeros((N, H), jnp.float32)
    for t in range(T):
        pre = (jnp.dot(cast(X[:, t, :]), cast(W_ih).T, precision=hp) + b_ih
               + jnp.dot(cast(h), cast(W_hh).T, precision=hp) + b_hh)
        h = act(pre)
    return jnp.dot(cast(h), cast(W_out).T, precision=hp) + b_out


if __name__ == "__main__":
    # Small shapes consistent with the module's forward.
    N, T, D_in, H, O = 2, 8, 16, 32, 10
    activation = "tanh"

    key = jax.random.PRNGKey(0)
    k = jax.random.split(key, 7)
    scale = 1.0 / jnp.sqrt(jnp.float32(H))  # PyTorch init is U(-1/sqrt(H), 1/sqrt(H))
    X = jax.random.normal(k[0], (N, T, D_in), jnp.float32)
    W_ih = jax.random.uniform(k[1], (H, D_in), jnp.float32, -scale, scale)
    W_hh = jax.random.uniform(k[2], (H, H), jnp.float32, -scale, scale)
    b_ih = jax.random.uniform(k[3], (H,), jnp.float32, -scale, scale)
    b_hh = jax.random.uniform(k[4], (H,), jnp.float32, -scale, scale)
    W_out = jax.random.uniform(k[5], (O, H), jnp.float32, -scale, scale)
    b_out = jax.random.uniform(k[6], (O,), jnp.float32, -scale, scale)

    out = rnn_forward(X, W_ih, W_hh, b_ih, b_hh, W_out, b_out, activation=activation)
    out = jax.block_until_ready(out)
    assert out.shape == (N, O)

    # At these sizes the kernel runs the recurrence in f32, so compare against the
    # f32 reference (tolerance covers MXU pass rounding / accumulation-order drift).
    ref = _reference_forward(X, W_ih, W_hh, b_ih, b_hh, W_out, b_out,
                             activation=activation, operand_dtype=jnp.float32)
    assert jnp.allclose(out, ref, atol=2e-2, rtol=2e-2), (out, ref)

    print("KERNEL_OK")
</pallas_src>

<mosaic_0001>
module attributes {stable_mosaic.version = 11 : i64} {
  func.func @_rnn_kernel(%arg0: i32, %arg1: i32, %arg2: memref<8x8x16xf32, #tpu.memory_space<vmem>>, %arg3: memref<16x32xf32, #tpu.memory_space<vmem>>, %arg4: memref<32x32xf32, #tpu.memory_space<vmem>>, %arg5: memref<1x32xf32, #tpu.memory_space<vmem>>, %arg6: memref<32x10xf32, #tpu.memory_space<vmem>>, %arg7: memref<1x10xf32, #tpu.memory_space<vmem>>, %arg8: memref<8x10xf32, #tpu.memory_space<vmem>>, %arg9: memref<8x32xf32, #tpu.memory_space<vmem>>, %arg10: memref<8x8x32xf32, #tpu.memory_space<vmem>>) attributes {dimension_semantics = [#tpu.dimension_semantics<parallel>, #tpu.dimension_semantics<arbitrary>], iteration_bounds = array<i64: 1, 1>, scalar_prefetch = 0 : i64, scratch_operands = 2 : i64, tpu.core_type = #tpu.core_type<tc>, window_params = [{transform_indices = @transform_0, window_bounds = array<i64: 8, 8, 16>}, {pipeline_mode = #tpu.pipeline_mode<synchronous>, transform_indices = @transform_1, window_bounds = array<i64: 16, 32>}, {pipeline_mode = #tpu.pipeline_mode<synchronous>, transform_indices = @transform_2, window_bounds = array<i64: 32, 32>}, {pipeline_mode = #tpu.pipeline_mode<synchronous>, transform_indices = @transform_3, window_bounds = array<i64: 1, 32>}, {pipeline_mode = #tpu.pipeline_mode<synchronous>, transform_indices = @transform_4, window_bounds = array<i64: 32, 10>}, {pipeline_mode = #tpu.pipeline_mode<synchronous>, transform_indices = @transform_5, window_bounds = array<i64: 1, 10>}, {transform_indices = @transform_6, window_bounds = array<i64: 8, 10>}]} {
    %c0_i32 = arith.constant 0 : i32
    %0 = arith.cmpi eq, %arg1, %c0_i32 : i32
    %1 = arith.extui %0 : i1 to i32
    %c0_i32_0 = arith.constant 0 : i32
    %2 = arith.cmpi ne, %1, %c0_i32_0 : i32
    scf.if %2 {
      %cst_43 = arith.constant 0.000000e+00 : f32
      %58 = vector.broadcast %cst_43 : f32 to vector<8x32xf32>
      %c0_44 = arith.constant 0 : index
      %c0_45 = arith.constant 0 : index
      %59 = vector.load %arg9[%c0_44, %c0_45] : memref<8x32xf32, #tpu.memory_space<vmem>>, vector<8x32xf32>
      tpu.vector_store %arg9[%c0_44, %c0_45], %58 {strides = array<i32>} : memref<8x32xf32, #tpu.memory_space<vmem>>, vector<8x32xf32>,
    } else {
    }
    %c0 = arith.constant 0 : index
    %c0_1 = arith.constant 0 : index
    %c0_2 = arith.constant 0 : index
    %3 = vector.load %arg2[%c0, %c0_1, %c0_2] : memref<8x8x16xf32, #tpu.memory_space<vmem>>, vector<8x8x16xf32>
    %4 = vector.shape_cast %3 : vector<8x8x16xf32> to vector<64x16xf32>
    %c0_3 = arith.constant 0 : index
    %c0_4 = arith.constant 0 : index
    %5 = vector.load %arg3[%c0_3, %c0_4] : memref<16x32xf32, #tpu.memory_space<vmem>>, vector<16x32xf32>
    %cst = arith.constant dense<0.000000e+00> : vector<64x32xf32>
    %6 = tpu.matmul %4, %5, %cst {dimension_numbers = #tpu.dot_dimension_numbers<[1], [0], [0], [1], [0, 0, 1, 1], [], []>} : vector<64x16xf32>, vector<16x32xf32>, vector<64x32xf32> -> vector<64x32xf32>
    %c0_5 = arith.constant 0 : index
    %c0_6 = arith.constant 0 : index
    %7 = vector.load %arg5[%c0_5, %c0_6] : memref<1x32xf32, #tpu.memory_space<vmem>>, vector<1x32xf32>
    %8 = vector.broadcast %7 : vector<1x32xf32> to vector<64x32xf32>
    %9 = arith.addf %6, %8 : vector<64x32xf32>
    %10 = vector.shape_cast %9 : vector<64x32xf32> to vector<8x8x32xf32>
    %c0_7 = arith.constant 0 : index
    %c0_8 = arith.constant 0 : index
    %c0_9 = arith.constant 0 : index
    %11 = vector.load %arg10[%c0_7, %c0_8, %c0_9] : memref<8x8x32xf32, #tpu.memory_space<vmem>>, vector<8x8x32xf32>
    tpu.vector_store %arg10[%c0_7, %c0_8, %c0_9], %10 {strides = array<i32>} : memref<8x8x32xf32, #tpu.memory_space<vmem>>, vector<8x8x32xf32>,
    %c0_10 = arith.constant 0 : index
    %c0_11 = arith.constant 0 : index
    %12 = vector.load %arg4[%c0_10, %c0_11] : memref<32x32xf32, #tpu.memory_space<vmem>>, vector<32x32xf32>
    %c0_12 = arith.constant 0 : index
    %c0_13 = arith.constant 0 : index
    %13 = vector.load %arg9[%c0_12, %c0_13] : memref<8x32xf32, #tpu.memory_space<vmem>>, vector<8x32xf32>
    %c0_14 = arith.constant 0 : index
    %c0_15 = arith.constant 0 : index
    %c0_16 = arith.constant 0 : index
    %14 = vector.load %arg10[%c0_14, %c0_15, %c0_16] : memref<8x8x32xf32, #tpu.memory_space<vmem>>, vector<1x8x32xf32>
    %15 = vector.shape_cast %14 : vector<1x8x32xf32> to vector<8x32xf32>
    %cst_17 = arith.constant dense<0.000000e+00> : vector<8x32xf32>
    %16 = tpu.matmul %13, %12, %cst_17 {dimension_numbers = #tpu.dot_dimension_numbers<[1], [0], [0], [1], [0, 0, 1, 1], [], []>} : vector<8x32xf32>, vector<32x32xf32>, vector<8x32xf32> -> vector<8x32xf32>
    %17 = arith.addf %15, %16 : vector<8x32xf32>
    %18 = math.tanh %17 : vector<8x32xf32>
    %c1 = arith.constant 1 : index
    %c0_18 = arith.constant 0 : index
    %c0_19 = arith.constant 0 : index
    %19 = vector.load %arg10[%c1, %c0_18, %c0_19] : memref<8x8x32xf32, #tpu.memory_space<vmem>>, vector<1x8x32xf32>
    %20 = vector.shape_cast %19 : vector<1x8x32xf32> to vector<8x32xf32>
    %cst_20 = arith.constant dense<0.000000e+00> : vector<8x32xf32>
    %21 = tpu.matmul %18, %12, %cst_20 {dimension_numbers = #tpu.dot_dimension_numbers<[1], [0], [0], [1], [0, 0, 1, 1], [], []>} : vector<8x32xf32>, vector<32x32xf32>, vector<8x32xf32> -> vector<8x32xf32>
    %22 = arith.addf %20, %21 : vector<8x32xf32>
    %23 = math.tanh %22 : vector<8x32xf32>
    %c2 = arith.constant 2 : index
    %c0_21 = arith.constant 0 : index
    %c0_22 = arith.constant 0 : index
    %24 = vector.load %arg10[%c2, %c0_21, %c0_22] : memref<8x8x32xf32, #tpu.memory_space<vmem>>, vector<1x8x32xf32>
    %25 = vector.shape_cast %24 : vector<1x8x32xf32> to vector<8x32xf32>
    %cst_23 = arith.constant dense<0.000000e+00> : vector<8x32xf32>
    %26 = tpu.matmul %23, %12, %cst_23 {dimension_numbers = #tpu.dot_dimension_numbers<[1], [0], [0], [1], [0, 0, 1, 1], [], []>} : vector<8x32xf32>, vector<32x32xf32>, vector<8x32xf32> -> vector<8x32xf32>
    %27 = arith.addf %25, %26 : vector<8x32xf32>
    %28 = math.tanh %27 : vector<8x32xf32>
    %c3 = arith.constant 3 : index
    %c0_24 = arith.constant 0 : index
    %c0_25 = arith.constant 0 : index
    %29 = vector.load %arg10[%c3, %c0_24, %c0_25] : memref<8x8x32xf32, #tpu.memory_space<vmem>>, vector<1x8x32xf32>
    %30 = vector.shape_cast %29 : vector<1x8x32xf32> to vector<8x32xf32>
    %cst_26 = arith.constant dense<0.000000e+00> : vector<8x32xf32>
    %31 = tpu.matmul %28, %12, %cst_26 {dimension_numbers = #tpu.dot_dimension_numbers<[1], [0], [0], [1], [0, 0, 1, 1], [], []>} : vector<8x32xf32>, vector<32x32xf32>, vector<8x32xf32> -> vector<8x32xf32>
    %32 = arith.addf %30, %31 : vector<8x32xf32>
    %33 = math.tanh %32 : vector<8x32xf32>
    %c4 = arith.constant 4 : index
    %c0_27 = arith.constant 0 : index
    %c0_28 = arith.constant 0 : index
    %34 = vector.load %arg10[%c4, %c0_27, %c0_28] : memref<8x8x32xf32, #tpu.memory_space<vmem>>, vector<1x8x32xf32>
    %35 = vector.shape_cast %34 : vector<1x8x32xf32> to vector<8x32xf32>
    %cst_29 = arith.constant dense<0.000000e+00> : vector<8x32xf32>
    %36 = tpu.matmul %33, %12, %cst_29 {dimension_numbers = #tpu.dot_dimension_numbers<[1], [0], [0], [1], [0, 0, 1, 1], [], []>} : vector<8x32xf32>, vector<32x32xf32>, vector<8x32xf32> -> vector<8x32xf32>
    %37 = arith.addf %35, %36 : vector<8x32xf32>
    %38 = math.tanh %37 : vector<8x32xf32>
    %c5 = arith.constant 5 : index
    %c0_30 = arith.constant 0 : index
    %c0_31 = arith.constant 0 : index
    %39 = vector.load %arg10[%c5, %c0_30, %c0_31] : memref<8x8x32xf32, #tpu.memory_space<vmem>>, vector<1x8x32xf32>
    %40 = vector.shape_cast %39 : vector<1x8x32xf32> to vector<8x32xf32>
    %cst_32 = arith.constant dense<0.000000e+00> : vector<8x32xf32>
    %41 = tpu.matmul %38, %12, %cst_32 {dimension_numbers = #tpu.dot_dimension_numbers<[1], [0], [0], [1], [0, 0, 1, 1], [], []>} : vector<8x32xf32>, vector<32x32xf32>, vector<8x32xf32> -> vector<8x32xf32>
    %42 = arith.addf %40, %41 : vector<8x32xf32>
    %43 = math.tanh %42 : vector<8x32xf32>
    %c6 = arith.constant 6 : index
    %c0_33 = arith.constant 0 : index
    %c0_34 = arith.constant 0 : index
    %44 = vector.load %arg10[%c6, %c0_33, %c0_34] : memref<8x8x32xf32, #tpu.memory_space<vmem>>, vector<1x8x32xf32>
    %45 = vector.shape_cast %44 : vector<1x8x32xf32> to vector<8x32xf32>
    %cst_35 = arith.constant dense<0.000000e+00> : vector<8x32xf32>
    %46 = tpu.matmul %43, %12, %cst_35 {dimension_numbers = #tpu.dot_dimension_numbers<[1], [0], [0], [1], [0, 0, 1, 1], [], []>} : vector<8x32xf32>, vector<32x32xf32>, vector<8x32xf32> -> vector<8x32xf32>
    %47 = arith.addf %45, %46 : vector<8x32xf32>
    %48 = math.tanh %47 : vector<8x32xf32>
    %c7 = arith.constant 7 : index
    %c0_36 = arith.constant 0 : index
    %c0_37 = arith.constant 0 : index
    %49 = vector.load %arg10[%c7, %c0_36, %c0_37] : memref<8x8x32xf32, #tpu.memory_space<vmem>>, vector<1x8x32xf32>
    %50 = vector.shape_cast %49 : vector<1x8x32xf32> to vector<8x32xf32>
    %cst_38 = arith.constant dense<0.000000e+00> : vector<8x32xf32>
    %51 = tpu.matmul %48, %12, %cst_38 {dimension_numbers = #tpu.dot_dimension_numbers<[1], [0], [0], [1], [0, 0, 1, 1], [], []>} : vector<8x32xf32>, vector<32x32xf32>, vector<8x32xf32> -> vector<8x32xf32>
    %52 = arith.addf %50, %51 : vector<8x32xf32>
    %53 = math.tanh %52 : vector<8x32xf32>
    %c0_39 = arith.constant 0 : index
    %c0_40 = arith.constant 0 : index
    %54 = vector.load %arg9[%c0_39, %c0_40] : memref<8x32xf32, #tpu.memory_space<vmem>>, vector<8x32xf32>
    tpu.vector_store %arg9[%c0_39, %c0_40], %53 {strides = array<i32>} : memref<8x32xf32, #tpu.memory_space<vmem>>, vector<8x32xf32>,
    %c0_i32_41 = arith.constant 0 : i32
    %55 = arith.cmpi eq, %arg1, %c0_i32_41 : i32
    %56 = arith.extui %55 : i1 to i32
    %c0_i32_42 = arith.constant 0 : i32
    %57 = arith.cmpi ne, %56, %c0_i32_42 : i32
    scf.if %57 {
      %c0_43 = arith.constant 0 : index
      %c0_44 = arith.constant 0 : index
      %58 = vector.load %arg6[%c0_43, %c0_44] : memref<32x10xf32, #tpu.memory_space<vmem>>, vector<32x10xf32>
      %cst_45 = arith.constant dense<0.000000e+00> : vector<8x10xf32>
      %59 = tpu.matmul %53, %58, %cst_45 {dimension_numbers = #tpu.dot_dimension_numbers<[1], [0], [0], [1], [0, 0, 1, 1], [], []>} : vector<8x32xf32>, vector<32x10xf32>, vector<8x10xf32> -> vector<8x10xf32>
      %c0_46 = arith.constant 0 : index
      %c0_47 = arith.constant 0 : index
      %60 = vector.load %arg7[%c0_46, %c0_47] : memref<1x10xf32, #tpu.memory_space<vmem>>, vector<1x10xf32>
      %61 = vector.broadcast %60 : vector<1x10xf32> to vector<8x10xf32>
      %62 = arith.addf %59, %61 : vector<8x10xf32>
      %c0_48 = arith.constant 0 : index
      %c0_49 = arith.constant 0 : index
      %63 = vector.load %arg8[%c0_48, %c0_49] : memref<8x10xf32, #tpu.memory_space<vmem>>, vector<8x10xf32>
      tpu.vector_store %arg8[%c0_48, %c0_49], %62 {strides = array<i32>} : memref<8x10xf32, #tpu.memory_space<vmem>>, vector<8x10xf32>,
    } else {
    }
    return
  }
  func.func @transform_0(%arg0: i32, %arg1: i32) -> (i32, i32, i32) {
    %c0_i32 = arith.constant 0 : i32
    %c0_i32_0 = arith.constant 0 : i32
    return %arg1, %arg0, %c0_i32 : i32, i32, i32
  }
  func.func @transform_1(%arg0: i32, %arg1: i32) -> (i32, i32) {
    %c0_i32 = arith.constant 0 : i32
    %c0_i32_0 = arith.constant 0 : i32
    %c0_i32_1 = arith.constant 0 : i32
    return %c0_i32, %c0_i32_0 : i32, i32
  }
  func.func @transform_2(%arg0: i32, %arg1: i32) -> (i32, i32) {
    %c0_i32 = arith.constant 0 : i32
    %c0_i32_0 = arith.constant 0 : i32
    %c0_i32_1 = arith.constant 0 : i32
    return %c0_i32, %c0_i32_0 : i32, i32
  }
  func.func @transform_3(%arg0: i32, %arg1: i32) -> (i32, i32) {
    %c0_i32 = arith.constant 0 : i32
    %c0_i32_0 = arith.constant 0 : i32
    %c0_i32_1 = arith.constant 0 : i32
    return %c0_i32, %c0_i32_0 : i32, i32
  }
  func.func @transform_4(%arg0: i32, %arg1: i32) -> (i32, i32) {
    %c0_i32 = arith.constant 0 : i32
    %c0_i32_0 = arith.constant 0 : i32
    %c0_i32_1 = arith.constant 0 : i32
    return %c0_i32, %c0_i32_0 : i32, i32
  }
  func.func @transform_5(%arg0: i32, %arg1: i32) -> (i32, i32) {
    %c0_i32 = arith.constant 0 : i32
    %c0_i32_0 = arith.constant 0 : i32
    %c0_i32_1 = arith.constant 0 : i32
    return %c0_i32, %c0_i32_0 : i32, i32
  }
  func.func @transform_6(%arg0: i32, %arg1: i32) -> (i32, i32) {
    %c0_i32 = arith.constant 0 : i32
    %c0_i32_0 = arith.constant 0 : i32
    return %arg0, %c0_i32 : i32, i32
  }
}

module attributes {stable_mosaic.version = 11 : i64} {
  func.func @_rnn_kernel(%arg0: i32, %arg1: i32, %arg2: memref<8x8x16xf32, #tpu.memory_space<vmem>>, %arg3: memref<16x32xf32, #tpu.memory_space<vmem>>, %arg4: memref<32x32xf32, #tpu.memory_space<vmem>>, %arg5: memref<1x32xf32, #tpu.memory_space<vmem>>, %arg6: memref<32x10xf32, #tpu.memory_space<vmem>>, %arg7: memref<1x10xf32, #tpu.memory_space<vmem>>, %arg8: memref<8x10xf32, #tpu.memory_space<vmem>>, %arg9: memref<8x32xf32, #tpu.memory_space<vmem>>, %arg10: memref<8x8x32xf32, #tpu.memory_space<vmem>>) attributes {dimension_semantics = [#tpu.dimension_semantics<parallel>, #tpu.dimension_semantics<arbitrary>], iteration_bounds = array<i64: 1, 1>, scalar_prefetch = 0 : i64, scratch_operands = 2 : i64, tpu.core_type = #tpu.core_type<tc>, window_params = [{transform_indices = @transform_0, window_bounds = array<i64: 8, 8, 16>}, {pipeline_mode = #tpu.pipeline_mode<synchronous>, transform_indices = @transform_1, window_bounds = array<i64: 16, 32>}, {pipeline_mode = #tpu.pipeline_mode<synchronous>, transform_indices = @transform_2, window_bounds = array<i64: 32, 32>}, {pipeline_mode = #tpu.pipeline_mode<synchronous>, transform_indices = @transform_3, window_bounds = array<i64: 1, 32>}, {pipeline_mode = #tpu.pipeline_mode<synchronous>, transform_indices = @transform_4, window_bounds = array<i64: 32, 10>}, {pipeline_mode = #tpu.pipeline_mode<synchronous>, transform_indices = @transform_5, window_bounds = array<i64: 1, 10>}, {transform_indices = @transform_6, window_bounds = array<i64: 8, 10>}]} {
    %c0_i32 = arith.constant 0 : i32
    %0 = arith.cmpi eq, %arg1, %c0_i32 : i32
    %1 = arith.extui %0 : i1 to i32
    %c0_i32_0 = arith.constant 0 : i32
    %2 = arith.cmpi ne, %1, %c0_i32_0 : i32
    scf.if %2 {
      %cst_43 = arith.constant 0.000000e+00 : f32
      %58 = vector.broadcast %cst_43 : f32 to vector<8x32xf32>
      %c0_44 = arith.constant 0 : index
      %c0_45 = arith.constant 0 : index
      %59 = vector.load %arg9[%c0_44, %c0_45] : memref<8x32xf32, #tpu.memory_space<vmem>>, vector<8x32xf32>
      tpu.vector_store %arg9[%c0_44, %c0_45], %58 {strides = array<i32>} : memref<8x32xf32, #tpu.memory_space<vmem>>, vector<8x32xf32>,
    } else {
    }
    %c0 = arith.constant 0 : index
    %c0_1 = arith.constant 0 : index
    %c0_2 = arith.constant 0 : index
    %3 = vector.load %arg2[%c0, %c0_1, %c0_2] : memref<8x8x16xf32, #tpu.memory_space<vmem>>, vector<8x8x16xf32>
    %4 = vector.shape_cast %3 : vector<8x8x16xf32> to vector<64x16xf32>
    %c0_3 = arith.constant 0 : index
    %c0_4 = arith.constant 0 : index
    %5 = vector.load %arg3[%c0_3, %c0_4] : memref<16x32xf32, #tpu.memory_space<vmem>>, vector<16x32xf32>
    %cst = arith.constant dense<0.000000e+00> : vector<64x32xf32>
    %6 = tpu.matmul %4, %5, %cst {dimension_numbers = #tpu.dot_dimension_numbers<[1], [0], [0], [1], [0, 0, 1, 1], [], []>} : vector<64x16xf32>, vector<16x32xf32>, vector<64x32xf32> -> vector<64x32xf32>
    %c0_5 = arith.constant 0 : index
    %c0_6 = arith.constant 0 : index
    %7 = vector.load %arg5[%c0_5, %c0_6] : memref<1x32xf32, #tpu.memory_space<vmem>>, vector<1x32xf32>
    %8 = vector.broadcast %7 : vector<1x32xf32> to vector<64x32xf32>
    %9 = arith.addf %6, %8 : vector<64x32xf32>
    %10 = vector.shape_cast %9 : vector<64x32xf32> to vector<8x8x32xf32>
    %c0_7 = arith.constant 0 : index
    %c0_8 = arith.constant 0 : index
    %c0_9 = arith.constant 0 : index
    %11 = vector.load %arg10[%c0_7, %c0_8, %c0_9] : memref<8x8x32xf32, #tpu.memory_space<vmem>>, vector<8x8x32xf32>
    tpu.vector_store %arg10[%c0_7, %c0_8, %c0_9], %10 {strides = array<i32>} : memref<8x8x32xf32, #tpu.memory_space<vmem>>, vector<8x8x32xf32>,
    %c0_10 = arith.constant 0 : index
    %c0_11 = arith.constant 0 : index
    %12 = vector.load %arg4[%c0_10, %c0_11] : memref<32x32xf32, #tpu.memory_space<vmem>>, vector<32x32xf32>
    %c0_12 = arith.constant 0 : index
    %c0_13 = arith.constant 0 : index
    %13 = vector.load %arg9[%c0_12, %c0_13] : memref<8x32xf32, #tpu.memory_space<vmem>>, vector<8x32xf32>
    %c0_14 = arith.constant 0 : index
    %c0_15 = arith.constant 0 : index
    %c0_16 = arith.constant 0 : index
    %14 = vector.load %arg10[%c0_14, %c0_15, %c0_16] : memref<8x8x32xf32, #tpu.memory_space<vmem>>, vector<1x8x32xf32>
    %15 = vector.shape_cast %14 : vector<1x8x32xf32> to vector<8x32xf32>
    %cst_17 = arith.constant dense<0.000000e+00> : vector<8x32xf32>
    %16 = tpu.matmul %13, %12, %cst_17 {dimension_numbers = #tpu.dot_dimension_numbers<[1], [0], [0], [1], [0, 0, 1, 1], [], []>} : vector<8x32xf32>, vector<32x32xf32>, vector<8x32xf32> -> vector<8x32xf32>
    %17 = arith.addf %15, %16 : vector<8x32xf32>
    %18 = math.tanh %17 : vector<8x32xf32>
    %c1 = arith.constant 1 : index
    %c0_18 = arith.constant 0 : index
    %c0_19 = arith.constant 0 : index
    %19 = vector.load %arg10[%c1, %c0_18, %c0_19] : memref<8x8x32xf32, #tpu.memory_space<vmem>>, vector<1x8x32xf32>
    %20 = vector.shape_cast %19 : vector<1x8x32xf32> to vector<8x32xf32>
    %cst_20 = arith.constant dense<0.000000e+00> : vector<8x32xf32>
    %21 = tpu.matmul %18, %12, %cst_20 {dimension_numbers = #tpu.dot_dimension_numbers<[1], [0], [0], [1], [0, 0, 1, 1], [], []>} : vector<8x32xf32>, vector<32x32xf32>, vector<8x32xf32> -> vector<8x32xf32>
    %22 = arith.addf %20, %21 : vector<8x32xf32>
    %23 = math.tanh %22 : vector<8x32xf32>
    %c2 = arith.constant 2 : index
    %c0_21 = arith.constant 0 : index
    %c0_22 = arith.constant 0 : index
    %24 = vector.load %arg10[%c2, %c0_21, %c0_22] : memref<8x8x32xf32, #tpu.memory_space<vmem>>, vector<1x8x32xf32>
    %25 = vector.shape_cast %24 : vector<1x8x32xf32> to vector<8x32xf32>
    %cst_23 = arith.constant dense<0.000000e+00> : vector<8x32xf32>
    %26 = tpu.matmul %23, %12, %cst_23 {dimension_numbers = #tpu.dot_dimension_numbers<[1], [0], [0], [1], [0, 0, 1, 1], [], []>} : vector<8x32xf32>, vector<32x32xf32>, vector<8x32xf32> -> vector<8x32xf32>
    %27 = arith.addf %25, %26 : vector<8x32xf32>
    %28 = math.tanh %27 : vector<8x32xf32>
    %c3 = arith.constant 3 : index
    %c0_24 = arith.constant 0 : index
    %c0_25 = arith.constant 0 : index
    %29 = vector.load %arg10[%c3, %c0_24, %c0_25] : memref<8x8x32xf32, #tpu.memory_space<vmem>>, vector<1x8x32xf32>
    %30 = vector.shape_cast %29 : vector<1x8x32xf32> to vector<8x32xf32>
    %cst_26 = arith.constant dense<0.000000e+00> : vector<8x32xf32>
    %31 = tpu.matmul %28, %12, %cst_26 {dimension_numbers = #tpu.dot_dimension_numbers<[1], [0], [0], [1], [0, 0, 1, 1], [], []>} : vector<8x32xf32>, vector<32x32xf32>, vector<8x32xf32> -> vector<8x32xf32>
    %32 = arith.addf %30, %31 : vector<8x32xf32>
    %33 = math.tanh %32 : vector<8x32xf32>
    %c4 = arith.constant 4 : index
    %c0_27 = arith.constant 0 : index
    %c0_28 = arith.constant 0 : index
    %34 = vector.load %arg10[%c4, %c0_27, %c0_28] : memref<8x8x32xf32, #tpu.memory_space<vmem>>, vector<1x8x32xf32>
    %35 = vector.shape_cast %34 : vector<1x8x32xf32> to vector<8x32xf32>
    %cst_29 = arith.constant dense<0.000000e+00> : vector<8x32xf32>
    %36 = tpu.matmul %33, %12, %cst_29 {dimension_numbers = #tpu.dot_dimension_numbers<[1], [0], [0], [1], [0, 0, 1, 1], [], []>} : vector<8x32xf32>, vector<32x32xf32>, vector<8x32xf32> -> vector<8x32xf32>
    %37 = arith.addf %35, %36 : vector<8x32xf32>
    %38 = math.tanh %37 : vector<8x32xf32>
    %c5 = arith.constant 5 : index
    %c0_30 = arith.constant 0 : index
    %c0_31 = arith.constant 0 : index
    %39 = vector.load %arg10[%c5, %c0_30, %c0_31] : memref<8x8x32xf32, #tpu.memory_space<vmem>>, vector<1x8x32xf32>
    %40 = vector.shape_cast %39 : vector<1x8x32xf32> to vector<8x32xf32>
    %cst_32 = arith.constant dense<0.000000e+00> : vector<8x32xf32>
    %41 = tpu.matmul %38, %12, %cst_32 {dimension_numbers = #tpu.dot_dimension_numbers<[1], [0], [0], [1], [0, 0, 1, 1], [], []>} : vector<8x32xf32>, vector<32x32xf32>, vector<8x32xf32> -> vector<8x32xf32>
    %42 = arith.addf %40, %41 : vector<8x32xf32>
    %43 = math.tanh %42 : vector<8x32xf32>
    %c6 = arith.constant 6 : index
    %c0_33 = arith.constant 0 : index
    %c0_34 = arith.constant 0 : index
    %44 = vector.load %arg10[%c6, %c0_33, %c0_34] : memref<8x8x32xf32, #tpu.memory_space<vmem>>, vector<1x8x32xf32>
    %45 = vector.shape_cast %44 : vector<1x8x32xf32> to vector<8x32xf32>
    %cst_35 = arith.constant dense<0.000000e+00> : vector<8x32xf32>
    %46 = tpu.matmul %43, %12, %cst_35 {dimension_numbers = #tpu.dot_dimension_numbers<[1], [0], [0], [1], [0, 0, 1, 1], [], []>} : vector<8x32xf32>, vector<32x32xf32>, vector<8x32xf32> -> vector<8x32xf32>
    %47 = arith.addf %45, %46 : vector<8x32xf32>
    %48 = math.tanh %47 : vector<8x32xf32>
    %c7 = arith.constant 7 : index
    %c0_36 = arith.constant 0 : index
    %c0_37 = arith.constant 0 : index
    %49 = vector.load %arg10[%c7, %c0_36, %c0_37] : memref<8x8x32xf32, #tpu.memory_space<vmem>>, vector<1x8x32xf32>
    %50 = vector.shape_cast %49 : vector<1x8x32xf32> to vector<8x32xf32>
    %cst_38 = arith.constant dense<0.000000e+00> : vector<8x32xf32>
    %51 = tpu.matmul %48, %12, %cst_38 {dimension_numbers = #tpu.dot_dimension_numbers<[1], [0], [0], [1], [0, 0, 1, 1], [], []>} : vector<8x32xf32>, vector<32x32xf32>, vector<8x32xf32> -> vector<8x32xf32>
    %52 = arith.addf %50, %51 : vector<8x32xf32>
    %53 = math.tanh %52 : vector<8x32xf32>
    %c0_39 = arith.constant 0 : index
    %c0_40 = arith.constant 0 : index
    %54 = vector.load %arg9[%c0_39, %c0_40] : memref<8x32xf32, #tpu.memory_space<vmem>>, vector<8x32xf32>
    tpu.vector_store %arg9[%c0_39, %c0_40], %53 {strides = array<i32>} : memref<8x32xf32, #tpu.memory_space<vmem>>, vector<8x32xf32>,
    %c0_i32_41 = arith.constant 0 : i32
    %55 = arith.cmpi eq, %arg1, %c0_i32_41 : i32
    %56 = arith.extui %55 : i1 to i32
    %c0_i32_42 = arith.constant 0 : i32
    %57 = arith.cmpi ne, %56, %c0_i32_42 : i32
    scf.if %57 {
      %c0_43 = arith.constant 0 : index
      %c0_44 = arith.constant 0 : index
      %58 = vector.load %arg6[%c0_43, %c0_44] : memref<32x10xf32, #tpu.memory_space<vmem>>, vector<32x10xf32>
      %cst_45 = arith.constant dense<0.000000e+00> : vector<8x10xf32>
      %59 = tpu.matmul %53, %58, %cst_45 {dimension_numbers = #tpu.dot_dimension_numbers<[1], [0], [0], [1], [0, 0, 1, 1], [], []>} : vector<8x32xf32>, vector<32x10xf32>, vector<8x10xf32> -> vector<8x10xf32>
      %c0_46 = arith.constant 0 : index
      %c0_47 = arith.constant 0 : index
      %60 = vector.load %arg7[%c0_46, %c0_47] : memref<1x10xf32, #tpu.memory_space<vmem>>, vector<1x10xf32>
      %61 = vector.broadcast %60 : vector<1x10xf32> to vector<8x10xf32>
      %62 = arith.addf %59, %61 : vector<8x10xf32>
      %c0_48 = arith.constant 0 : index
      %c0_49 = arith.constant 0 : index
      %63 = vector.load %arg8[%c0_48, %c0_49] : memref<8x10xf32, #tpu.memory_space<vmem>>, vector<8x10xf32>
      tpu.vector_store %arg8[%c0_48, %c0_49], %62 {strides = array<i32>} : memref<8x10xf32, #tpu.memory_space<vmem>>, vector<8x10xf32>,
    } else {
    }
    return
  }
  func.func @transform_0(%arg0: i32, %arg1: i32) -> (i32, i32, i32) {
    %c0_i32 = arith.constant 0 : i32
    %c0_i32_0 = arith.constant 0 : i32
    return %arg1, %arg0, %c0_i32 : i32, i32, i32
  }
  func.func @transform_1(%arg0: i32, %arg1: i32) -> (i32, i32) {
    %c0_i32 = arith.constant 0 : i32
    %c0_i32_0 = arith.constant 0 : i32
    %c0_i32_1 = arith.constant 0 : i32
    return %c0_i32, %c0_i32_0 : i32, i32
  }
  func.func @transform_2(%arg0: i32, %arg1: i32) -> (i32, i32) {
    %c0_i32 = arith.constant 0 : i32
    %c0_i32_0 = arith.constant 0 : i32
    %c0_i32_1 = arith.constant 0 : i32
    return %c0_i32, %c0_i32_0 : i32, i32
  }
  func.func @transform_3(%arg0: i32, %arg1: i32) -> (i32, i32) {
    %c0_i32 = arith.constant 0 : i32
    %c0_i32_0 = arith.constant 0 : i32
    %c0_i32_1 = arith.constant 0 : i32
    return %c0_i32, %c0_i32_0 : i32, i32
  }
  func.func @transform_4(%arg0: i32, %arg1: i32) -> (i32, i32) {
    %c0_i32 = arith.constant 0 : i32
    %c0_i32_0 = arith.constant 0 : i32
    %c0_i32_1 = arith.constant 0 : i32
    return %c0_i32, %c0_i32_0 : i32, i32
  }
  func.func @transform_5(%arg0: i32, %arg1: i32) -> (i32, i32) {
    %c0_i32 = arith.constant 0 : i32
    %c0_i32_0 = arith.constant 0 : i32
    %c0_i32_1 = arith.constant 0 : i32
    return %c0_i32, %c0_i32_0 : i32, i32
  }
  func.func @transform_6(%arg0: i32, %arg1: i32) -> (i32, i32) {
    %c0_i32 = arith.constant 0 : i32
    %c0_i32_0 = arith.constant 0 : i32
    return %arg0, %c0_i32 : i32, i32
  }
}

</mosaic_0001>

<bundles_post_ra>
// kernel: tpu_custom_call.1
= control target key start
LH: loop header
LB: loop body
LE: loop exit
PB: predicated region body
PF: predicated region fallthrough
CT: control target
= control target key end

     0   :  { %11 = vsyncpa [#allocation5], 0  ;;  %s614_s0 = inlined_call_operand.hbm [shape: f32[8,8,16], index: 0, kind: input, shape index: {}]   ;;  %s615_s1 = inlined_call_operand.vmem [shape: f32[16,32], index: 1, kind: input, shape index: {}]   ;;  %s616_s2 = inlined_call_operand.vmem [shape: f32[32,32], index: 2, kind: input, shape index: {}]   ;;  %s617_s3 = inlined_call_operand.vmem [shape: f32[1,32], index: 3, kind: input, shape index: {}]   ;;  %s618_s4 = inlined_call_operand.vmem [shape: f32[32,10], index: 4, kind: input, shape index: {}]   ;;  %s619_s5 = inlined_call_operand.vmem [shape: f32[1,10], index: 5, kind: input, shape index: {}]   ;;  %s620_s6 = inlined_call_operand.hbm [shape: f32[8,10], index: 6, kind: output, shape index: {}]  }
   0x1   :  { %12 = vsyncpa [#allocation6], 0  ;;  %s17_s23 = sshll.u32 %s614_s0, 4  ;;  %s505_s24 = smov [#allocation4]   ;;  %s18_s23 = int_to_ptr.hbm [resolvable:$true] %s17_s23 }
   0x2   :  { %s19_s25 = sshll.u32 %s505_s24, 4  ;;  %s506_s26 = smov 128   ;;  %s20_s25 = int_to_ptr.vmem [resolvable:$true] %s19_s25 }
   0x3   :  { %s507_s27 = smov 8  }
   0x4   :  { %25 = dma.hbm_to_vmem [thread:$0]  %s18_s23, 1024, %s20_s25, [#allocation5], %s506_s26, %s506_s26, %s507_s27  }
   0x5   :  { %501 = dma.done.wait [#allocation5], 1024  }
   0x6   :  { %502 = vsyncadd [#allocation5], 4294966272  ;;  %vm44_vm0 = vcmask 261120   ;;  %v508_v0 = vmov 0.0   ;;  %v55_v1 = vld [vmem:[%s615_s1 + $0x8] sm:$0xff]  ;;  %v54_v2 = vld [vmem:[%s615_s1] sm:$0xff] }
   0x7   :  { %45 = vst.msk [vmem:[#allocation2] sm:$0xff] %vm44_vm0, %v508_v0  ;;  %99 = vmatpush.msra.mxu0 %v55_v1  ;;  %426 = vmatpush.msra.mxu1 %v55_v1  ;;  %v46_v3 = vld [vmem:[#allocation4] sm:$0xff]  ;;  %vm60_vm1 = vcmask 130048   ;;  %v51_v4 = vld [vmem:[#allocation4 + $0x28] sm:$0xff]  ;;  %v138_v5 = vld [vmem:[%s616_s2 + $0x18] sm:$0xff]  ;;  %s509_s24 = smov [#allocation7]  }
   0x8   :  { %427 = vmatpush.msra.mxu2 %v55_v1  ;;  %210 = vmatpush.msra.mxu3 %v138_v5  ;;  %v137_v6 = vld [vmem:[%s616_s2 + $0x10] sm:$0xff]  ;;  %v136_v7 = vld [vmem:[%s616_s2 + $0x8] sm:$0xff]  ;;  %v135_v8 = vld [vmem:[%s616_s2] sm:$0xff]  ;;  %s397_s25 = sshll.u32 %s509_s24, 4  ;;  %vm390_vm2 = vcmask 80896   ;;  %s398_s25 = int_to_ptr.vmem [resolvable:$true] %s397_s25 }
   0x9   :  { %100 = vmatpush.msra.mxu0 %v54_v2  ;;  %428 = vmatpush.msra.mxu1 %v54_v2  ;;  %v52_v10 = vld [vmem:[#allocation4 + $0x30] sm:$0xff]  ;;  %v53_v11 = vld [vmem:[#allocation4 + $0x38] sm:$0xff]  ;;  %v47_v12 = vld [vmem:[#allocation4 + $0x8] sm:$0xff] }
   0xa   :  { %409 = vmatmul.msk.f32.vlgmr.msra.gmra.mxu0 %vm60_vm1, %v46_v3  ;;  %414 = vmatmul.msk.f32.vlgmr.msra.gmra.mxu1 %vm60_vm1, %v51_v4  ;;  %v435_v13 = vld [vmem:[%s617_s3] ss:$0 sm:$0xff]  ;;  %v48_v28 = vld [vmem:[#allocation4 + $0x10] sm:$0xff]  ;;  %v50_v42 = vld [vmem:[#allocation4 + $0x20] sm:$0xff] }
   0xb   :  { %156 = vmatpush.msrb.mxu1 %v138_v5  ;;  %429 = vmatpush.msra.mxu2 %v54_v2  ;;  %v49_v33 = vld [vmem:[#allocation4 + $0x18] sm:$0xff]  ;;  %v362_v61 = vld [vmem:[%s618_s4 + $0x18] sm:$0xff]  ;;  %v361_v62 = vld [vmem:[%s618_s4 + $0x10] sm:$0xff] }
   0xc   :  { %211 = vmatpush.msra.mxu3 %v137_v6  ;;  %415 = vmatmul.msk.f32.vlgmr.msra.gmra.mxu2 %vm60_vm1, %v52_v10  ;;  %v360_v63 = vld [vmem:[%s618_s4 + $0x8] sm:$0xff]  ;;  %v359_v0 = vld [vmem:[%s618_s4] sm:$0xff]  ;;  %s399_s4 = sshll.u32 %s620_s6, 4  ;;  %s400_s4 = int_to_ptr.hbm [resolvable:$true] %s399_s4 }
   0xd   :  { %183 = vmatpush.msrb.mxu2 %v138_v5  ;;  %157 = vmatpush.msrb.mxu1 %v137_v6 }
   0xe   :  { %212 = vmatpush.msra.mxu3 %v136_v7  ;;  %v139_v9 = vld [vmem:[#allocation2] sm:$0xff] }
   0xf   :  { %184 = vmatpush.msrb.mxu2 %v137_v6  ;;  %158 = vmatpush.msrb.mxu1 %v136_v7 }
  0x10   :  { %213 = vmatpush.msra.mxu3 %v135_v8 }
  0x11   :  { %185 = vmatpush.msrb.mxu2 %v136_v7  ;;  %159 = vmatpush.msrb.mxu1 %v135_v8 }
  0x12   :  { %291 = vmatpush.msrb.mxu3 %v138_v5  ;;  %417 = vmatmul.msk.f32.vlgmr.msrb.gmra.mxu1 %vm44_vm0, %v139_v9 }
  0x13   :  { %186 = vmatpush.msrb.mxu2 %v135_v8  ;;  %237 = vmatpush.msra.mxu1 %v138_v5 }
  0x14   :  { %292 = vmatpush.msrb.mxu3 %v137_v6  ;;  %416 = vmatmul.msk.f32.gmra.mxu2 %vm60_vm1, %v53_v11 }
  0x15   :  { %238 = vmatpush.msra.mxu1 %v137_v6  ;;  %264 = vmatpush.msra.mxu2 %v138_v5 }
  0x16   :  { %293 = vmatpush.msrb.mxu3 %v136_v7  ;;  %410 = vmatmul.msk.f32.gmra.mxu0 %vm60_vm1, %v47_v12 }
  0x17   :  { %239 = vmatpush.msra.mxu1 %v136_v7  ;;  %265 = vmatpush.msra.mxu2 %v137_v6 }
  0x18   :  { %294 = vmatpush.msrb.mxu3 %v135_v8 }
  0x19   :  { %240 = vmatpush.msra.mxu1 %v135_v8  ;;  %266 = vmatpush.msra.mxu2 %v136_v7 }
  0x1b   :  { %318 = vmatpush.msrb.mxu1 %v138_v5  ;;  %267 = vmatpush.msra.mxu2 %v135_v8 }
  0x1d   :  { %319 = vmatpush.msrb.mxu1 %v137_v6 }
  0x1e   :  { %411 = vmatmul.msk.f32.gmra.mxu0 %vm60_vm1, %v48_v28 }
  0x1f   :  { %320 = vmatpush.msrb.mxu1 %v136_v7 }
  0x21   :  { %321 = vmatpush.msrb.mxu1 %v135_v8 }
  0x26   :  { %412 = vmatmul.msk.f32.gmra.mxu0 %vm60_vm1, %v49_v33 }
  0x2e   :  { %413 = vmatmul.msk.f32.gmra.mxu0 %vm60_vm1, %v50_v42 }
  0x87   :  { %v102_v14 = vpop.f32.mrf.mxu0  ;;  %v117_v15 = vpop.f32.mrf.mxu1 }
  0x88   :  { %v103_v16 = vadd.f32 %v435_v13, %v102_v14  ;;  %v118_v17 = vadd.f32 %v435_v13, %v117_v15 }
  0x8a   :  { %127 = vst.msk [vmem:[#allocation3] sm:$0xff] %vm44_vm0, %v103_v16 }
  0x8b   :  { %132 = vst.msk [vmem:[#allocation3 + $0x28] sm:$0xff] %vm44_vm0, %v118_v17 }
  0x8f   :  { %v161_v18 = vpop.f32.mrf.mxu1  ;;  %v120_v22 = vpop.f32.mrf.mxu2 }
  0x90   :  { %v121_v23 = vadd.f32 %v435_v13, %v120_v22 }
  0x91   :  { %v140_v19 = vld [vmem:[#allocation3] sm:$0xff] }
  0x92   :  { %v164_v20 = vadd.f32 %v161_v18, %v140_v19  ;;  %133 = vst.msk [vmem:[#allocation3 + $0x30] sm:$0xff] %vm44_vm0, %v121_v23  ;;  %v275_v53 = vld [vmem:[#allocation3 + $0x28] sm:$0xff] }
  0x93   :  { %v105_v24 = vpop.f32.mrf.mxu0 }
  0x94   :  { %437 = vtanh.f32 %v164_v20  ;;  %v106_v25 = vadd.f32 %v435_v13, %v105_v24 }
  0x96   :  { %128 = vst.msk [vmem:[#allocation3 + $0x8] sm:$0xff] %vm44_vm0, %v106_v25 }
  0x97   :  { %v123_v26 = vpop.f32.mrf.mxu2 }
  0x98   :  { %v124_v27 = vadd.f32 %v435_v13, %v123_v26 }
  0x99   :  { %v302_v57 = vld [vmem:[#allocation3 + $0x30] sm:$0xff] }
  0x9a   :  { %v438_v21 = vpop.eup %437  ;;  %134 = vst.msk [vmem:[#allocation3 + $0x38] sm:$0xff] %vm44_vm0, %v124_v27 }
  0x9b   :  { %418 = vmatmul.msk.f32.vlgmr.msrb.gmra.mxu2 %vm44_vm0, %v438_v21  ;;  %v108_v34 = vpop.f32.mrf.mxu0 }
  0x9c   :  { %345 = vmatpush.msrb.mxu2 %v138_v5  ;;  %v109_v35 = vadd.f32 %v435_v13, %v108_v34  ;;  %v436_v5 = vld [vmem:[%s619_s5] ss:$0 sm:$0xff] }
  0x9d   :  { %v167_v29 = vld [vmem:[#allocation3 + $0x8] sm:$0xff] }
  0x9e   :  { %346 = vmatpush.msrb.mxu2 %v137_v6  ;;  %129 = vst.msk [vmem:[#allocation3 + $0x10] sm:$0xff] %vm44_vm0, %v109_v35 }
  0xa0   :  { %347 = vmatpush.msrb.mxu2 %v136_v7 }
  0xa1   :  { %v329_v1 = vld [vmem:[#allocation3 + $0x38] sm:$0xff] }
  0xa2   :  { %348 = vmatpush.msrb.mxu2 %v135_v8 }
  0xa3   :  { %v111_v40 = vpop.f32.mrf.mxu0 }
  0xa4   :  { %v112_v41 = vadd.f32 %v435_v13, %v111_v40 }
  0xa5   :  { %v194_v36 = vld [vmem:[#allocation3 + $0x10] sm:$0xff] }
  0xa6   :  { %130 = vst.msk [vmem:[#allocation3 + $0x18] sm:$0xff] %vm44_vm0, %v112_v41 }
  0xab   :  { %v114_v47 = vpop.f32.mrf.mxu0 }
  0xac   :  { %v115_v48 = vadd.f32 %v435_v13, %v114_v47 }
  0xad   :  { %v221_v43 = vld [vmem:[#allocation3 + $0x18] sm:$0xff] }
  0xae   :  { %131 = vst.msk [vmem:[#allocation3 + $0x20] sm:$0xff] %vm44_vm0, %v115_v48 }
  0xb5   :  { %v248_v49 = vld [vmem:[#allocation3 + $0x20] sm:$0xff] }
 0x11e   :  { %v188_v30 = vpop.f32.mrf.mxu2 }
 0x11f   :  { %v191_v31 = vadd.f32 %v188_v30, %v167_v29 }
 0x121   :  { %439 = vtanh.f32 %v191_v31 }
 0x127   :  { %v440_v32 = vpop.eup %439 }
 0x128   :  { %419 = vmatmul.msk.f32.vlgmr.msra.gmra.mxu3 %vm44_vm0, %v440_v32 }
 0x129   :  { %382 = vmatpush.msra.mxu3 %v362_v61 }
 0x12b   :  { %383 = vmatpush.msra.mxu3 %v361_v62 }
 0x12d   :  { %384 = vmatpush.msra.mxu3 %v360_v63 }
 0x12f   :  { %385 = vmatpush.msra.mxu3 %v359_v0 }
 0x1ab   :  { %v215_v37 = vpop.f32.mrf.mxu3 }
 0x1ac   :  { %v218_v38 = vadd.f32 %v215_v37, %v194_v36 }
 0x1ae   :  { %441 = vtanh.f32 %v218_v38 }
 0x1b4   :  { %v442_v39 = vpop.eup %441 }
 0x1b5   :  { %420 = vmatmul.msk.f32.vlgmr.msra.gmra.mxu1 %vm44_vm0, %v442_v39 }
 0x232   :  { %v242_v44 = vpop.f32.mrf.mxu1 }
 0x233   :  { %v245_v45 = vadd.f32 %v242_v44, %v221_v43 }
 0x235   :  { %443 = vtanh.f32 %v245_v45 }
 0x23b   :  { %v444_v46 = vpop.eup %443 }
 0x23c   :  { %421 = vmatmul.msk.f32.vlgmr.msra.gmra.mxu2 %vm44_vm0, %v444_v46 }
 0x2bf   :  { %v269_v50 = vpop.f32.mrf.mxu2 }
 0x2c0   :  { %v272_v51 = vadd.f32 %v269_v50, %v248_v49 }
 0x2c2   :  { %445 = vtanh.f32 %v272_v51 }
 0x2c8   :  { %v446_v52 = vpop.eup %445 }
 0x2c9   :  { %422 = vmatmul.msk.f32.vlgmr.msrb.gmra.mxu3 %vm44_vm0, %v446_v52 }
 0x34c   :  { %v296_v54 = vpop.f32.mrf.mxu3 }
 0x34d   :  { %v299_v55 = vadd.f32 %v296_v54, %v275_v53 }
 0x34f   :  { %447 = vtanh.f32 %v299_v55 }
 0x355   :  { %v448_v56 = vpop.eup %447 }
 0x356   :  { %423 = vmatmul.msk.f32.vlgmr.msrb.gmra.mxu1 %vm44_vm0, %v448_v56 }
 0x3d3   :  { %v323_v58 = vpop.f32.mrf.mxu1 }
 0x3d4   :  { %v326_v59 = vadd.f32 %v323_v58, %v302_v57 }
 0x3d6   :  { %449 = vtanh.f32 %v326_v59 }
 0x3dc   :  { %v450_v60 = vpop.eup %449 }
 0x3dd   :  { %424 = vmatmul.msk.f32.vlgmr.msrb.gmra.mxu2 %vm44_vm0, %v450_v60 }
 0x460   :  { %v350_v2 = vpop.f32.mrf.mxu2 }
 0x461   :  { %v353_v3 = vadd.f32 %v350_v2, %v329_v1 }
 0x463   :  { %451 = vtanh.f32 %v353_v3 }
 0x469   :  { %v452_v4 = vpop.eup %451 }
 0x46a   :  { %355 = vst.msk [vmem:[#allocation2] sm:$0xff] %vm44_vm0, %v452_v4  ;;  %425 = vmatmul.msk.f32.vlgmr.msra.gmra.mxu3 %vm44_vm0, %v452_v4 }
 0x4ed   :  { %v387_v6 = vpop.f32.mrf.mxu3 }
 0x4ee   :  { %v388_v7 = vadd.f32 %v436_v5, %v387_v6 }
 0x4f0   :  { %391 = vst.msk [vmem:[#allocation7] sm:$0xff] %vm390_vm2, %v388_v7 }
 0x4f1   :  { %402 = dma.vmem_to_hbm [thread:$0]  %s398_s25, 128, %s400_s4, [#allocation6]  }
 0x4f2   :  { %503 = dma.done.wait [#allocation6], 128  }
 0x4f3   :  { %504 = vsyncadd [#allocation6], 4294967168 }
 0x4f4   :  { %407 = vsyncpa [#allocation5], 1 }
 0x4f5   :  { %408 = vsyncpa [#allocation6], 1 }

// kernel: tpu_custom_call.1
= control target key start
LH: loop header
LB: loop body
LE: loop exit
PB: predicated region body
PF: predicated region fallthrough
CT: control target
= control target key end

     0   :  { %11 = vsyncpa [#allocation5], 0  ;;  %s614_s0 = inlined_call_operand.hbm [shape: f32[8,8,16], index: 0, kind: input, shape index: {}]   ;;  %s615_s1 = inlined_call_operand.vmem [shape: f32[16,32], index: 1, kind: input, shape index: {}]   ;;  %s616_s2 = inlined_call_operand.vmem [shape: f32[32,32], index: 2, kind: input, shape index: {}]   ;;  %s617_s3 = inlined_call_operand.vmem [shape: f32[1,32], index: 3, kind: input, shape index: {}]   ;;  %s618_s4 = inlined_call_operand.vmem [shape: f32[32,10], index: 4, kind: input, shape index: {}]   ;;  %s619_s5 = inlined_call_operand.vmem [shape: f32[1,10], index: 5, kind: input, shape index: {}]   ;;  %s620_s6 = inlined_call_operand.hbm [shape: f32[8,10], index: 6, kind: output, shape index: {}]  }
   0x1   :  { %12 = vsyncpa [#allocation6], 0  ;;  %s17_s23 = sshll.u32 %s614_s0, 4  ;;  %s505_s24 = smov [#allocation4]   ;;  %s18_s23 = int_to_ptr.hbm [resolvable:$true] %s17_s23 }
   0x2   :  { %s19_s25 = sshll.u32 %s505_s24, 4  ;;  %s506_s26 = smov 128   ;;  %s20_s25 = int_to_ptr.vmem [resolvable:$true] %s19_s25 }
   0x3   :  { %s507_s27 = smov 8  }
   0x4   :  { %25 = dma.hbm_to_vmem [thread:$0]  %s18_s23, 1024, %s20_s25, [#allocation5], %s506_s26, %s506_s26, %s507_s27  }
   0x5   :  { %501 = dma.done.wait [#allocation5], 1024  }
   0x6   :  { %502 = vsyncadd [#allocation5], 4294966272  ;;  %vm44_vm0 = vcmask 261120   ;;  %v508_v0 = vmov 0.0   ;;  %v55_v1 = vld [vmem:[%s615_s1 + $0x8] sm:$0xff]  ;;  %v54_v2 = vld [vmem:[%s615_s1] sm:$0xff] }
   0x7   :  { %45 = vst.msk [vmem:[#allocation2] sm:$0xff] %vm44_vm0, %v508_v0  ;;  %99 = vmatpush.msra.mxu0 %v55_v1  ;;  %426 = vmatpush.msra.mxu1 %v55_v1  ;;  %v46_v3 = vld [vmem:[#allocation4] sm:$0xff]  ;;  %vm60_vm1 = vcmask 130048   ;;  %v51_v4 = vld [vmem:[#allocation4 + $0x28] sm:$0xff]  ;;  %v138_v5 = vld [vmem:[%s616_s2 + $0x18] sm:$0xff]  ;;  %s509_s24 = smov [#allocation7]  }
   0x8   :  { %427 = vmatpush.msra.mxu2 %v55_v1  ;;  %210 = vmatpush.msra.mxu3 %v138_v5  ;;  %v137_v6 = vld [vmem:[%s616_s2 + $0x10] sm:$0xff]  ;;  %v136_v7 = vld [vmem:[%s616_s2 + $0x8] sm:$0xff]  ;;  %v135_v8 = vld [vmem:[%s616_s2] sm:$0xff]  ;;  %s397_s25 = sshll.u32 %s509_s24, 4  ;;  %vm390_vm2 = vcmask 80896   ;;  %s398_s25 = int_to_ptr.vmem [resolvable:$true] %s397_s25 }
   0x9   :  { %100 = vmatpush.msra.mxu0 %v54_v2  ;;  %428 = vmatpush.msra.mxu1 %v54_v2  ;;  %v52_v10 = vld [vmem:[#allocation4 + $0x30] sm:$0xff]  ;;  %v53_v11 = vld [vmem:[#allocation4 + $0x38] sm:$0xff]  ;;  %v47_v12 = vld [vmem:[#allocation4 + $0x8] sm:$0xff] }
   0xa   :  { %409 = vmatmul.msk.f32.vlgmr.msra.gmra.mxu0 %vm60_vm1, %v46_v3  ;;  %414 = vmatmul.msk.f32.vlgmr.msra.gmra.mxu1 %vm60_vm1, %v51_v4  ;;  %v435_v13 = vld [vmem:[%s617_s3] ss:$0 sm:$0xff]  ;;  %v48_v28 = vld [vmem:[#allocation4 + $0x10] sm:$0xff]  ;;  %v50_v42 = vld [vmem:[#allocation4 + $0x20] sm:$0xff] }
   0xb   :  { %156 = vmatpush.msrb.mxu1 %v138_v5  ;;  %429 = vmatpush.msra.mxu2 %v54_v2  ;;  %v49_v33 = vld [vmem:[#allocation4 + $0x18] sm:$0xff]  ;;  %v362_v61 = vld [vmem:[%s618_s4 + $0x18] sm:$0xff]  ;;  %v361_v62 = vld [vmem:[%s618_s4 + $0x10] sm:$0xff] }
   0xc   :  { %211 = vmatpush.msra.mxu3 %v137_v6  ;;  %415 = vmatmul.msk.f32.vlgmr.msra.gmra.mxu2 %vm60_vm1, %v52_v10  ;;  %v360_v63 = vld [vmem:[%s618_s4 + $0x8] sm:$0xff]  ;;  %v359_v0 = vld [vmem:[%s618_s4] sm:$0xff]  ;;  %s399_s4 = sshll.u32 %s620_s6, 4  ;;  %s400_s4 = int_to_ptr.hbm [resolvable:$true] %s399_s4 }
   0xd   :  { %183 = vmatpush.msrb.mxu2 %v138_v5  ;;  %157 = vmatpush.msrb.mxu1 %v137_v6 }
   0xe   :  { %212 = vmatpush.msra.mxu3 %v136_v7  ;;  %v139_v9 = vld [vmem:[#allocation2] sm:$0xff] }
   0xf   :  { %184 = vmatpush.msrb.mxu2 %v137_v6  ;;  %158 = vmatpush.msrb.mxu1 %v136_v7 }
  0x10   :  { %213 = vmatpush.msra.mxu3 %v135_v8 }
  0x11   :  { %185 = vmatpush.msrb.mxu2 %v136_v7  ;;  %159 = vmatpush.msrb.mxu1 %v135_v8 }
  0x12   :  { %291 = vmatpush.msrb.mxu3 %v138_v5  ;;  %417 = vmatmul.msk.f32.vlgmr.msrb.gmra.mxu1 %vm44_vm0, %v139_v9 }
  0x13   :  { %186 = vmatpush.msrb.mxu2 %v135_v8  ;;  %237 = vmatpush.msra.mxu1 %v138_v5 }
  0x14   :  { %292 = vmatpush.msrb.mxu3 %v137_v6  ;;  %416 = vmatmul.msk.f32.gmra.mxu2 %vm60_vm1, %v53_v11 }
  0x15   :  { %238 = vmatpush.msra.mxu1 %v137_v6  ;;  %264 = vmatpush.msra.mxu2 %v138_v5 }
  0x16   :  { %293 = vmatpush.msrb.mxu3 %v136_v7  ;;  %410 = vmatmul.msk.f32.gmra.mxu0 %vm60_vm1, %v47_v12 }
  0x17   :  { %239 = vmatpush.msra.mxu1 %v136_v7  ;;  %265 = vmatpush.msra.mxu2 %v137_v6 }
  0x18   :  { %294 = vmatpush.msrb.mxu3 %v135_v8 }
  0x19   :  { %240 = vmatpush.msra.mxu1 %v135_v8  ;;  %266 = vmatpush.msra.mxu2 %v136_v7 }
  0x1b   :  { %318 = vmatpush.msrb.mxu1 %v138_v5  ;;  %267 = vmatpush.msra.mxu2 %v135_v8 }
  0x1d   :  { %319 = vmatpush.msrb.mxu1 %v137_v6 }
  0x1e   :  { %411 = vmatmul.msk.f32.gmra.mxu0 %vm60_vm1, %v48_v28 }
  0x1f   :  { %320 = vmatpush.msrb.mxu1 %v136_v7 }
  0x21   :  { %321 = vmatpush.msrb.mxu1 %v135_v8 }
  0x26   :  { %412 = vmatmul.msk.f32.gmra.mxu0 %vm60_vm1, %v49_v33 }
  0x2e   :  { %413 = vmatmul.msk.f32.gmra.mxu0 %vm60_vm1, %v50_v42 }
  0x87   :  { %v102_v14 = vpop.f32.mrf.mxu0  ;;  %v117_v15 = vpop.f32.mrf.mxu1 }
  0x88   :  { %v103_v16 = vadd.f32 %v435_v13, %v102_v14  ;;  %v118_v17 = vadd.f32 %v435_v13, %v117_v15 }
  0x8a   :  { %127 = vst.msk [vmem:[#allocation3] sm:$0xff] %vm44_vm0, %v103_v16 }
  0x8b   :  { %132 = vst.msk [vmem:[#allocation3 + $0x28] sm:$0xff] %vm44_vm0, %v118_v17 }
  0x8f   :  { %v161_v18 = vpop.f32.mrf.mxu1  ;;  %v120_v22 = vpop.f32.mrf.mxu2 }
  0x90   :  { %v121_v23 = vadd.f32 %v435_v13, %v120_v22 }
  0x91   :  { %v140_v19 = vld [vmem:[#allocation3] sm:$0xff] }
  0x92   :  { %v164_v20 = vadd.f32 %v161_v18, %v140_v19  ;;  %133 = vst.msk [vmem:[#allocation3 + $0x30] sm:$0xff] %vm44_vm0, %v121_v23  ;;  %v275_v53 = vld [vmem:[#allocation3 + $0x28] sm:$0xff] }
  0x93   :  { %v105_v24 = vpop.f32.mrf.mxu0 }
  0x94   :  { %437 = vtanh.f32 %v164_v20  ;;  %v106_v25 = vadd.f32 %v435_v13, %v105_v24 }
  0x96   :  { %128 = vst.msk [vmem:[#allocation3 + $0x8] sm:$0xff] %vm44_vm0, %v106_v25 }
  0x97   :  { %v123_v26 = vpop.f32.mrf.mxu2 }
  0x98   :  { %v124_v27 = vadd.f32 %v435_v13, %v123_v26 }
  0x99   :  { %v302_v57 = vld [vmem:[#allocation3 + $0x30] sm:$0xff] }
  0x9a   :  { %v438_v21 = vpop.eup %437  ;;  %134 = vst.msk [vmem:[#allocation3 + $0x38] sm:$0xff] %vm44_vm0, %v124_v27 }
  0x9b   :  { %418 = vmatmul.msk.f32.vlgmr.msrb.gmra.mxu2 %vm44_vm0, %v438_v21  ;;  %v108_v34 = vpop.f32.mrf.mxu0 }
  0x9c   :  { %345 = vmatpush.msrb.mxu2 %v138_v5  ;;  %v109_v35 = vadd.f32 %v435_v13, %v108_v34  ;;  %v436_v5 = vld [vmem:[%s619_s5] ss:$0 sm:$0xff] }
  0x9d   :  { %v167_v29 = vld [vmem:[#allocation3 + $0x8] sm:$0xff] }
  0x9e   :  { %346 = vmatpush.msrb.mxu2 %v137_v6  ;;  %129 = vst.msk [vmem:[#allocation3 + $0x10] sm:$0xff] %vm44_vm0, %v109_v35 }
  0xa0   :  { %347 = vmatpush.msrb.mxu2 %v136_v7 }
  0xa1   :  { %v329_v1 = vld [vmem:[#allocation3 + $0x38] sm:$0xff] }
  0xa2   :  { %348 = vmatpush.msrb.mxu2 %v135_v8 }
  0xa3   :  { %v111_v40 = vpop.f32.mrf.mxu0 }
  0xa4   :  { %v112_v41 = vadd.f32 %v435_v13, %v111_v40 }
  0xa5   :  { %v194_v36 = vld [vmem:[#allocation3 + $0x10] sm:$0xff] }
  0xa6   :  { %130 = vst.msk [vmem:[#allocation3 + $0x18] sm:$0xff] %vm44_vm0, %v112_v41 }
  0xab   :  { %v114_v47 = vpop.f32.mrf.mxu0 }
  0xac   :  { %v115_v48 = vadd.f32 %v435_v13, %v114_v47 }
  0xad   :  { %v221_v43 = vld [vmem:[#allocation3 + $0x18] sm:$0xff] }
  0xae   :  { %131 = vst.msk [vmem:[#allocation3 + $0x20] sm:$0xff] %vm44_vm0, %v115_v48 }
  0xb5   :  { %v248_v49 = vld [vmem:[#allocation3 + $0x20] sm:$0xff] }
 0x11e   :  { %v188_v30 = vpop.f32.mrf.mxu2 }
 0x11f   :  { %v191_v31 = vadd.f32 %v188_v30, %v167_v29 }
 0x121   :  { %439 = vtanh.f32 %v191_v31 }
 0x127   :  { %v440_v32 = vpop.eup %439 }
 0x128   :  { %419 = vmatmul.msk.f32.vlgmr.msra.gmra.mxu3 %vm44_vm0, %v440_v32 }
 0x129   :  { %382 = vmatpush.msra.mxu3 %v362_v61 }
 0x12b   :  { %383 = vmatpush.msra.mxu3 %v361_v62 }
 0x12d   :  { %384 = vmatpush.msra.mxu3 %v360_v63 }
 0x12f   :  { %385 = vmatpush.msra.mxu3 %v359_v0 }
 0x1ab   :  { %v215_v37 = vpop.f32.mrf.mxu3 }
 0x1ac   :  { %v218_v38 = vadd.f32 %v215_v37, %v194_v36 }
 0x1ae   :  { %441 = vtanh.f32 %v218_v38 }
 0x1b4   :  { %v442_v39 = vpop.eup %441 }
 0x1b5   :  { %420 = vmatmul.msk.f32.vlgmr.msra.gmra.mxu1 %vm44_vm0, %v442_v39 }
 0x232   :  { %v242_v44 = vpop.f32.mrf.mxu1 }
 0x233   :  { %v245_v45 = vadd.f32 %v242_v44, %v221_v43 }
 0x235   :  { %443 = vtanh.f32 %v245_v45 }
 0x23b   :  { %v444_v46 = vpop.eup %443 }
 0x23c   :  { %421 = vmatmul.msk.f32.vlgmr.msra.gmra.mxu2 %vm44_vm0, %v444_v46 }
 0x2bf   :  { %v269_v50 = vpop.f32.mrf.mxu2 }
 0x2c0   :  { %v272_v51 = vadd.f32 %v269_v50, %v248_v49 }
 0x2c2   :  { %445 = vtanh.f32 %v272_v51 }
 0x2c8   :  { %v446_v52 = vpop.eup %445 }
 0x2c9   :  { %422 = vmatmul.msk.f32.vlgmr.msrb.gmra.mxu3 %vm44_vm0, %v446_v52 }
 0x34c   :  { %v296_v54 = vpop.f32.mrf.mxu3 }
 0x34d   :  { %v299_v55 = vadd.f32 %v296_v54, %v275_v53 }
 0x34f   :  { %447 = vtanh.f32 %v299_v55 }
 0x355   :  { %v448_v56 = vpop.eup %447 }
 0x356   :  { %423 = vmatmul.msk.f32.vlgmr.msrb.gmra.mxu1 %vm44_vm0, %v448_v56 }
 0x3d3   :  { %v323_v58 = vpop.f32.mrf.mxu1 }
 0x3d4   :  { %v326_v59 = vadd.f32 %v323_v58, %v302_v57 }
 0x3d6   :  { %449 = vtanh.f32 %v326_v59 }
 0x3dc   :  { %v450_v60 = vpop.eup %449 }
 0x3dd   :  { %424 = vmatmul.msk.f32.vlgmr.msrb.gmra.mxu2 %vm44_vm0, %v450_v60 }
 0x460   :  { %v350_v2 = vpop.f32.mrf.mxu2 }
 0x461   :  { %v353_v3 = vadd.f32 %v350_v2, %v329_v1 }
 0x463   :  { %451 = vtanh.f32 %v353_v3 }
 0x469   :  { %v452_v4 = vpop.eup %451 }
 0x46a   :  { %355 = vst.msk [vmem:[#allocation2] sm:$0xff] %vm44_vm0, %v452_v4  ;;  %425 = vmatmul.msk.f32.vlgmr.msra.gmra.mxu3 %vm44_vm0, %v452_v4 }
 0x4ed   :  { %v387_v6 = vpop.f32.mrf.mxu3 }
 0x4ee   :  { %v388_v7 = vadd.f32 %v436_v5, %v387_v6 }
 0x4f0   :  { %391 = vst.msk [vmem:[#allocation7] sm:$0xff] %vm390_vm2, %v388_v7 }
 0x4f1   :  { %402 = dma.vmem_to_hbm [thread:$0]  %s398_s25, 128, %s400_s4, [#allocation6]  }
 0x4f2   :  { %503 = dma.done.wait [#allocation6], 128  }
 0x4f3   :  { %504 = vsyncadd [#allocation6], 4294967168 }
 0x4f4   :  { %407 = vsyncpa [#allocation5], 1 }
 0x4f5   :  { %408 = vsyncpa [#allocation6], 1 }

</bundles_post_ra>
